<compile_context>
chip_gen: v6e
topology: v6e:2x2x1
jax: 0.10.0
libtpu: 0.0.40
codegen_flags: <defaults>
</compile_context>

<pallas_src>
import functools

import jax
import jax.numpy as jnp
from jax.experimental import pallas as pl
from jax.experimental.pallas import tpu as pltpu


def _fbeta_kernel(logits_ref, labels_ref, out_ref, *,
                  beta: float, small_value: float,
                  batch: int, block_b: int, mask_tail: bool):
    # Upcast immediately; all math in f32 (required on v5e, harmless elsewhere).
    p = jax.nn.sigmoid(logits_ref[...].astype(jnp.float32))
    l = labels_ref[...].astype(jnp.float32)

    # Class-axis (lane) reductions, kept 2-D (block_b, 1) to avoid 1-D relayouts.
    num_pos = jnp.sum(p, axis=1, keepdims=True) + small_value       # sum(p, 1) + eps
    num_pos_hat = jnp.sum(l, axis=1, keepdims=True) + small_value   # sum(l, 1) + eps
    tp = jnp.sum(l * p, axis=1, keepdims=True)                      # sum(l * p, 1)

    precise = tp / num_pos
    recall = tp / num_pos_hat
    b2 = beta * beta
    fs = (1.0 + b2) * precise * recall / (b2 * precise + recall + small_value)

    if mask_tail:
        # Partial last tile: rows >= batch hold undefined data. Select (not
        # multiply) so NaN/Inf in the unselected branch cannot propagate.
        row = (pl.program_id(0) * block_b
               + jax.lax.broadcasted_iota(jnp.int32, fs.shape, 0))
        fs = jnp.where(row < batch, fs, jnp.float32(0.0))

    # Per-tile partial sum -> this tile's own lane-dense output block
    # (no cross-step accumulator -> the grid axis can stay "parallel").
    partial = jnp.sum(fs)
    out_ref[...] = jnp.full(out_ref.shape, partial, dtype=jnp.float32)


def _vmem_capacity_bytes() -> int:
    """Physical VMEM per core (128 MiB v5e/v6e, 64 MiB v7x); conservative fallback."""
    try:
        info = pltpu.get_tpu_info()
        cap = getattr(info, "vmem_capacity_bytes", None)
        if cap:
            return int(cap)
    except Exception:
        pass
    return 64 * 1024 * 1024


def _choose_block_b(B: int, C: int, vmem_cap: int) -> int:
    # Amortize the ~0.35 us fixed per-grid-step overhead with large tiles:
    # ~8 MiB of f32 logits per tile on 128 MiB-VMEM chips (v5e/v6e),
    # ~4 MiB on 64 MiB-VMEM chips (v7x), leaving room for double-buffered
    # inputs plus ~3x f32 intermediates inside the body.
    target_f32_bytes = (8 * 1024 * 1024 if vmem_cap >= 100 * 1024 * 1024
                        else 4 * 1024 * 1024)
    bb = (target_f32_bytes // (C * 4)) // 32 * 32   # multiple of 32 (covers int8/bool labels)
    bb = max(32, min(bb, 4096))
    if bb >= B:
        return B          # single full-extent tile: no sublane-divisibility constraint
    return int(bb)


def fbeta_loss(logits: jax.Array, labels: jax.Array,
               beta: float = 1.0, small_value: float = 1e-6,
               block_b: int | None = None) -> jax.Array:
    """Pallas implementation of FbetaLoss.forward (returns a scalar)."""
    B, C = logits.shape
    assert labels.shape == (B, C)

    vmem_cap = _vmem_capacity_bytes()
    if block_b is None:
        block_b = _choose_block_b(B, C, vmem_cap)
    else:
        block_b = int(block_b)
        block_b = B if block_b >= B else max(32, (block_b // 32) * 32)

    num_tiles = pl.cdiv(B, block_b)
    mask_tail = (num_tiles * block_b != B)   # static: only mask when the last tile is partial

    # VMEM budget: 2 pipeline buffers per input + ~3x f32 intermediates of one
    # tile (p, upcast labels, l*p) + margin; clamp to 3/4 of physical VMEM.
    tile_elems = block_b * C
    in_bytes = tile_elems * (jnp.dtype(logits.dtype).itemsize
                             + jnp.dtype(labels.dtype).itemsize)
    needed = 2 * in_bytes + 3 * tile_elems * 4 + (2 << 20)
    vmem_limit = int(min(max(needed, 32 << 20), (vmem_cap * 3) // 4))

    kernel = functools.partial(
        _fbeta_kernel, beta=float(beta), small_value=float(small_value),
        batch=B, block_b=block_b, mask_tail=mask_tail)

    partials = pl.pallas_call(
        kernel,
        out_shape=jax.ShapeDtypeStruct((num_tiles, 8, 128), jnp.float32),
        grid_spec=pltpu.PrefetchScalarGridSpec(
            num_scalar_prefetch=0,
            grid=(num_tiles,),
            in_specs=[
                pl.BlockSpec((block_b, C), lambda i: (i, 0)),   # logits (native dtype)
                pl.BlockSpec((block_b, C), lambda i: (i, 0)),   # labels (native dtype)
            ],
            out_specs=pl.BlockSpec((1, 8, 128), lambda i: (i, 0, 0)),
        ),
        compiler_params=pltpu.CompilerParams(
            dimension_semantics=("parallel",),   # independent tiles -> both TCs on v7x
            vmem_limit_bytes=vmem_limit,
        ),
    )(logits, labels)

    # Tiny final reduce in plain JAX (num_tiles scalars), then 1 - sum(fs)/B.
    return 1.0 - jnp.sum(partials[:, 0, 0]) / jnp.float32(B)


def fbeta_loss_ref(logits, labels, beta=1.0, small_value=1e-6):
    """Pure-JAX reference mirroring the PyTorch module exactly."""
    batch_size = logits.shape[0]
    p = jax.nn.sigmoid(logits)
    l = labels
    num_pos = jnp.sum(p, axis=1) + small_value
    num_pos_hat = jnp.sum(l, axis=1) + small_value
    tp = jnp.sum(l * p, axis=1)
    precise = tp / num_pos
    recall = tp / num_pos_hat
    fs = (1 + beta * beta) * precise * recall / (beta * beta * precise + recall + small_value)
    return 1.0 - jnp.sum(fs) / batch_size


if __name__ == "__main__":
    key = jax.random.PRNGKey(0)
    k1, k2 = jax.random.split(key)

    # Small multi-label problem: 16 samples, 256 classes (single full-extent tile).
    B, C = 16, 256
    logits = jax.random.normal(k1, (B, C), dtype=jnp.float32)
    labels = (jax.random.uniform(k2, (B, C)) < 0.1).astype(jnp.float32)

    loss = jax.block_until_ready(fbeta_loss(logits, labels, beta=1.0))
    ref = jax.block_until_ready(fbeta_loss_ref(logits, labels, beta=1.0))
    assert jnp.allclose(loss, ref, atol=1e-5, rtol=1e-5), (loss, ref)

    # Ragged, multi-tile case: exercises the in-kernel tail-masking path
    # (B=100, block_b=32 -> 4 tiles, last tile only 4 valid rows).
    B2 = 100
    logits2 = jax.random.normal(k1, (B2, C), dtype=jnp.float32)
    labels2 = (jax.random.uniform(k2, (B2, C)) < 0.1).astype(jnp.float32)
    loss2 = jax.block_until_ready(fbeta_loss(logits2, labels2, beta=2.0, block_b=32))
    ref2 = jax.block_until_ready(fbeta_loss_ref(logits2, labels2, beta=2.0))
    assert jnp.allclose(loss2, ref2, atol=1e-5, rtol=1e-5), (loss2, ref2)

    print("KERNEL_OK")
</pallas_src>

<mosaic_0001>
module attributes {stable_mosaic.version = 11 : i64} {
  func.func @_fbeta_kernel(%arg0: i32, %arg1: memref<16x256xf32, #tpu.memory_space<vmem>>, %arg2: memref<16x256xf32, #tpu.memory_space<vmem>>, %arg3: memref<1x8x128xf32, #tpu.memory_space<vmem>>) attributes {dimension_semantics = [#tpu.dimension_semantics<parallel>], iteration_bounds = array<i64: 1>, scalar_prefetch = 0 : i64, scratch_operands = 0 : i64, tpu.core_type = #tpu.core_type<tc>, window_params = [{transform_indices = @transform_0, window_bounds = array<i64: 16, 256>}, {transform_indices = @transform_1, window_bounds = array<i64: 16, 256>}, {transform_indices = @transform_2, window_bounds = array<i64: 1, 8, 128>}]} {
    %c0 = arith.constant 0 : index
    %c0_0 = arith.constant 0 : index
    %0 = vector.load %arg1[%c0, %c0_0] : memref<16x256xf32, #tpu.memory_space<vmem>>, vector<16x256xf32>
    %1 = arith.negf %0 : vector<16x256xf32>
    %2 = math.exp %1 : vector<16x256xf32>
    %cst = arith.constant 1.000000e+00 : f32
    %3 = vector.broadcast %cst : f32 to vector<16x256xf32>
    %4 = arith.addf %3, %2 : vector<16x256xf32>
    %5 = arith.divf %3, %4 : vector<16x256xf32>
    %c0_1 = arith.constant 0 : index
    %c0_2 = arith.constant 0 : index
    %6 = vector.load %arg2[%c0_1, %c0_2] : memref<16x256xf32, #tpu.memory_space<vmem>>, vector<16x256xf32>
    %cst_3 = arith.constant dense<0.000000e+00> : vector<16xf32>
    %7 = vector.multi_reduction <add>, %5, %cst_3 [1] : vector<16x256xf32> to vector<16xf32>
    %8 = vector.shape_cast %7 : vector<16xf32> to vector<16x1xf32>
    %cst_4 = arith.constant 9.99999997E-7 : f32
    %9 = vector.broadcast %cst_4 : f32 to vector<16x1xf32>
    %10 = arith.addf %8, %9 : vector<16x1xf32>
    %cst_5 = arith.constant dense<0.000000e+00> : vector<16xf32>
    %11 = vector.multi_reduction <add>, %6, %cst_5 [1] : vector<16x256xf32> to vector<16xf32>
    %12 = vector.shape_cast %11 : vector<16xf32> to vector<16x1xf32>
    %cst_6 = arith.constant 9.99999997E-7 : f32
    %13 = vector.broadcast %cst_6 : f32 to vector<16x1xf32>
    %14 = arith.addf %12, %13 : vector<16x1xf32>
    %15 = arith.mulf %6, %5 : vector<16x256xf32>
    %cst_7 = arith.constant dense<0.000000e+00> : vector<16xf32>
    %16 = vector.multi_reduction <add>, %15, %cst_7 [1] : vector<16x256xf32> to vector<16xf32>
    %17 = vector.shape_cast %16 : vector<16xf32> to vector<16x1xf32>
    %18 = arith.divf %17, %10 : vector<16x1xf32>
    %19 = arith.divf %17, %14 : vector<16x1xf32>
    %cst_8 = arith.constant 2.000000e+00 : f32
    %20 = vector.broadcast %cst_8 : f32 to vector<16x1xf32>
    %21 = arith.mulf %20, %18 : vector<16x1xf32>
    %22 = arith.mulf %21, %19 : vector<16x1xf32>
    %cst_9 = arith.constant 1.000000e+00 : f32
    %23 = vector.broadcast %cst_9 : f32 to vector<16x1xf32>
    %24 = arith.mulf %23, %18 : vector<16x1xf32>
    %25 = arith.addf %24, %19 : vector<16x1xf32>
    %cst_10 = arith.constant 9.99999997E-7 : f32
    %26 = vector.broadcast %cst_10 : f32 to vector<16x1xf32>
    %27 = arith.addf %25, %26 : vector<16x1xf32>
    %28 = arith.divf %22, %27 : vector<16x1xf32>
    %29 = vector.shape_cast %28 : vector<16x1xf32> to vector<1x16x1xf32>
    %cst_11 = arith.constant dense<0.000000e+00> : vector<1xf32>
    %30 = vector.multi_reduction <add>, %29, %cst_11 [1, 2] : vector<1x16x1xf32> to vector<1xf32>
    %31 = vector.shape_cast %30 : vector<1xf32> to vector<1x1x1xf32>
    %32 = vector.extract %31[0, 0, 0] : f32 from vector<1x1x1xf32>
    %33 = vector.broadcast %32 : f32 to vector<1x8x128xf32>
    %c0_12 = arith.constant 0 : index
    %c0_13 = arith.constant 0 : index
    %c0_14 = arith.constant 0 : index
    %34 = vector.load %arg3[%c0_12, %c0_13, %c0_14] : memref<1x8x128xf32, #tpu.memory_space<vmem>>, vector<1x8x128xf32>
    tpu.vector_store %arg3[%c0_12, %c0_13, %c0_14], %33 {strides = array<i32>} : memref<1x8x128xf32, #tpu.memory_space<vmem>>, vector<1x8x128xf32>,
    return
  }
  func.func @transform_0(%arg0: i32) -> (i32, i32) {
    %c0_i32 = arith.constant 0 : i32
    %c0_i32_0 = arith.constant 0 : i32
    return %arg0, %c0_i32 : i32, i32
  }
  func.func @transform_1(%arg0: i32) -> (i32, i32) {
    %c0_i32 = arith.constant 0 : i32
    %c0_i32_0 = arith.constant 0 : i32
    return %arg0, %c0_i32 : i32, i32
  }
  func.func @transform_2(%arg0: i32) -> (i32, i32, i32) {
    %c0_i32 = arith.constant 0 : i32
    %c0_i32_0 = arith.constant 0 : i32
    %c0_i32_1 = arith.constant 0 : i32
    return %arg0, %c0_i32, %c0_i32_0 : i32, i32, i32
  }
}

</mosaic_0001>

<bundles_post_ra>
// kernel: tpu_custom_call.1
= control target key start
LH: loop header
LB: loop body
LE: loop exit
PB: predicated region body
PF: predicated region fallthrough
CT: control target
= control target key end

     0   :  { %7 = vsyncpa [#allocation3], 0  ;;  %s283_s0 = inlined_call_operand.hbm [shape: f32[16,256], index: 0, kind: input, shape index: {}]   ;;  %s284_s1 = inlined_call_operand.hbm [shape: f32[16,256], index: 1, kind: input, shape index: {}]   ;;  %s285_s2 = inlined_call_operand.hbm [shape: f32[1,8,128], index: 2, kind: output, shape index: {}]  }
   0x1   :  { %8 = vsyncpa [#allocation6], 0 }
   0x2   :  { %9 = vsyncpa [#allocation4], 0  ;;  %s254_s9 = smov [#allocation2]  }
   0x3   :  { %s15_s10 = sshll.u32 %s254_s9, 4  ;;  %s16_s10 = int_to_ptr.vmem [resolvable:$true] %s15_s10 }
   0x4   :  { %s196_s11 = scalar_lea.vmem %s16_s10, 512  ;;  %p201_p1 = scmp.lt.s32.totalorder %s16_s10, %s16_s10 }
   0x5   :  { %p197_p0 = scmp.ne.s32.totalorder %s16_s10, %s196_s11  ;;  %p202_p2 = scmp.lt.s32.totalorder %s196_s11, %s196_s11 }
   0x7   :  { %p203_p3 = por %p202_p2, %p201_p1 }
   0x9   :  { %p204_p4 = pnand %p203_p3, %p197_p0 }
   0xb   :  { %207 = shalt.err (!%p204_p4)
}
   0xc   :  { %s255_s12 = smov 256   ;;  %s256_s13 = smov 16  }
   0xd   :  { %21 = dma.hbm_to_vmem [thread:$0]  %s283_s0, 512, %s16_s10, [#allocation3], %s255_s12, %s255_s12, %s256_s13  }
   0xe   :  { %s257_s16 = smov [#allocation5]  }
   0xf   :  { %s27_s17 = sshll.u32 %s257_s16, 4  ;;  %s28_s17 = int_to_ptr.vmem [resolvable:$true] %s27_s17 }
  0x10   :  { %s216_s18 = scalar_lea.vmem %s28_s17, 512  ;;  %p221_p6 = scmp.lt.s32.totalorder %s28_s17, %s28_s17 }
  0x11   :  { %p217_p5 = scmp.ne.s32.totalorder %s28_s17, %s216_s18  ;;  %p222_p7 = scmp.lt.s32.totalorder %s216_s18, %s216_s18 }
  0x13   :  { %p223_p8 = por %p222_p7, %p221_p6 }
  0x15   :  { %p224_p9 = pnand %p223_p8, %p217_p5 }
  0x17   :  { %227 = shalt.err (!%p224_p9)
}
  0x18   :  { %33 = dma.hbm_to_vmem [thread:$0]  %s284_s1, 512, %s28_s17, [#allocation6], %s255_s12, %s255_s12, %s256_s13  }
  0x19   :  { %248 = dma.done.wait [#allocation3], 512  }
  0x1a   :  { %249 = vsyncadd [#allocation3], 4294966784 }
  0x1b   :  { %250 = dma.done.wait [#allocation6], 512  }
  0x1c   :  { %251 = vsyncadd [#allocation6], 4294966784  ;;  %v68_v0 = vld [vmem:[#allocation5] sm:$0xff]  ;;  %v69_v1 = vld [vmem:[#allocation5 + $0x8] sm:$0xff]  ;;  %vm118_vm0 = vcmask 7168   ;;  %s258_s0 = smov [#allocation7]  }
  0x1d   :  { %v40_v2 = vld [vmem:[#allocation2] sm:$0xff]  ;;  %v80_v3 = vadd.f32 %v69_v1, %v68_v0  ;;  %v41_v4 = vld [vmem:[#allocation2 + $0x8] sm:$0xff]  ;;  %v70_v6 = vld [vmem:[#allocation5 + $0x10] sm:$0xff]  ;;  %s139_s1 = sshll.u32 %s258_s0, 4  ;;  %s140_s1 = int_to_ptr.vmem [resolvable:$true] %s139_s1 }
  0x1e   :  { %v149_v5 = vmul.f32 -1.442695, %v40_v2  ;;  %v71_v7 = vld [vmem:[#allocation5 + $0x18] sm:$0xff]  ;;  %v150_v8 = vmul.f32 -1.442695, %v41_v4  ;;  %v42_v9 = vld [vmem:[#allocation2 + $0x10] sm:$0xff]  ;;  %p233_p11 = scmp.lt.s32.totalorder %s140_s1, %s140_s1 }
  0x1f   :  { %v43_v10 = vld [vmem:[#allocation2 + $0x18] sm:$0xff]  ;;  %81 = vadd.xlane.f32.xlu1 %v80_v3  ;;  %v83_v11 = vadd.f32 %v71_v7, %v70_v6  ;;  %v151_v12 = vmul.f32 -1.442695, %v42_v9  ;;  %s228_s22 = scalar_lea.vmem %s140_s1, 128 }
  0x20   :  { %160 = vpow2.f32 %v149_v5  ;;  %v152_v13 = vmul.f32 -1.442695, %v43_v10  ;;  %p229_p10 = scmp.ne.s32.totalorder %s140_s1, %s228_s22  ;;  %p234_p12 = scmp.lt.s32.totalorder %s228_s22, %s228_s22 }
  0x21   :  { %162 = vpow2.f32 %v150_v8 }
  0x22   :  { %164 = vpow2.f32 %v151_v12  ;;  %p235_p13 = por %p234_p12, %p233_p11 }
  0x23   :  { %166 = vpow2.f32 %v152_v13  ;;  %84 = vadd.xlane.f32.xlu1 %v83_v11 }
  0x24   :  { %p236_p0 = pnand %p235_p13, %p229_p10 }
  0x2d   :  { %v161_v14 = vpop.eup %160 }
  0x2e   :  { %v163_v15 = vpop.eup %162  ;;  %v56_v16 = vadd.f32 1.0, %v161_v14 }
  0x2f   :  { %v165_v17 = vpop.eup %164  ;;  %v57_v18 = vadd.f32 1.0, %v163_v15 }
  0x30   :  { %v167_v19 = vpop.eup %166  ;;  %168 = vrcp.f32 %v56_v16  ;;  %v58_v20 = vadd.f32 1.0, %v165_v17 }
  0x31   :  { %170 = vrcp.f32 %v57_v18  ;;  %v59_v21 = vadd.f32 1.0, %v167_v19 }
  0x32   :  { %172 = vrcp.f32 %v58_v20 }
  0x33   :  { %174 = vrcp.f32 %v59_v21 }
  0x3d   :  { %v169_v22 = vpop.eup %168 }
  0x3e   :  { %v171_v23 = vpop.eup %170  ;;  %v88_v28 = vmul.f32 %v169_v22, %v68_v0 }
  0x3f   :  { %v173_v24 = vpop.eup %172  ;;  %v72_v25 = vadd.f32 %v171_v23, %v169_v22  ;;  %v89_v29 = vmul.f32 %v171_v23, %v69_v1 }
  0x40   :  { %v175_v26 = vpop.eup %174  ;;  %v90_v27 = vmul.f32 %v173_v24, %v70_v6 }
  0x41   :  { %73 = vadd.xlane.f32.xlu0 %v72_v25  ;;  %v75_v30 = vadd.f32 %v175_v26, %v173_v24  ;;  %v91_v31 = vmul.f32 %v175_v26, %v71_v7  ;;  %v92_v33 = vadd.f32 %v89_v29, %v88_v28 }
  0x43   :  { %v95_v32 = vadd.f32 %v91_v31, %v90_v27 }
  0x45   :  { %76 = vadd.xlane.f32.xlu0 %v75_v30  ;;  %96 = vadd.xlane.f32.xlu1 %v95_v32 }
  0x49   :  { %93 = vadd.xlane.f32.xlu0 %v92_v33 }
  0xa8   :  { %v82_v34 = vpop.xlane.xlu1 %81 }
  0xa9   :  { %v86_v35 = vadd.f32 1e-06, %v82_v34 }
  0xab   :  { %176 = vrcp.f32 %v86_v35 }
  0xac   :  { %v85_v36 = vpop.xlane.xlu1 %84 }
  0xad   :  { %v87_v37 = vadd.f32 1e-06, %v85_v36 }
  0xaf   :  { %178 = vrcp.f32 %v87_v37 }
  0xb8   :  { %v177_v42 = vpop.eup %176 }
  0xbc   :  { %v179_v44 = vpop.eup %178 }
  0xca   :  { %v74_v38 = vpop.xlane.xlu0 %73 }
  0xcb   :  { %v78_v39 = vadd.f32 1e-06, %v74_v38 }
  0xcd   :  { %180 = vrcp.f32 %v78_v39 }
  0xce   :  { %v77_v40 = vpop.xlane.xlu0 %76  ;;  %v97_v47 = vpop.xlane.xlu1 %96 }
  0xcf   :  { %v79_v41 = vadd.f32 1e-06, %v77_v40  ;;  %v105_v50 = vmul.f32 %v179_v44, %v97_v47 }
  0xd1   :  { %182 = vrcp.f32 %v79_v41 }
  0xd2   :  { %v94_v43 = vpop.xlane.xlu0 %93 }
  0xd3   :  { %v103_v45 = vmul.f32 %v177_v42, %v94_v43 }
  0xda   :  { %v181_v46 = vpop.eup %180 }
  0xdb   :  { %v99_v48 = vmul.f32 %v181_v46, %v94_v43 }
  0xdd   :  { %v110_v49 = vadd.f32 %v103_v45, %v99_v48  ;;  %v106_v56 = vmul.f32 2.0, %v99_v48 }
  0xde   :  { %v183_v51 = vpop.eup %182 }
  0xdf   :  { %v112_v52 = vadd.f32 1e-06, %v110_v49  ;;  %v101_v53 = vmul.f32 %v183_v51, %v97_v47  ;;  %v108_v59 = vmul.f32 %v106_v56, %v103_v45 }
  0xe1   :  { %184 = vrcp.f32 %v112_v52  ;;  %v111_v54 = vadd.f32 %v105_v50, %v101_v53  ;;  %v107_v57 = vmul.f32 2.0, %v101_v53 }
  0xe3   :  { %v113_v55 = vadd.f32 1e-06, %v111_v54  ;;  %v109_v60 = vmul.f32 %v107_v57, %v105_v50 }
  0xe5   :  { %186 = vrcp.f32 %v113_v55 }
  0xee   :  { %v185_v58 = vpop.eup %184 }
  0xef   :  { %v115_v61 = vmul.f32 %v185_v58, %v108_v59 }
  0xf1   :  { %v119_v0 = vsel %vm118_vm0, %v115_v61, 0.0 }
  0xf2   :  { %v187_v62 = vpop.eup %186 }
  0xf3   :  { %v117_v63 = vmul.f32 %v187_v62, %v109_v60 }
  0xf5   :  { %v120_v1 = vsel %vm118_vm0, %v117_v63, 0.0 }
  0xf6   :  { %v121_v2 = vadd.f32 %v120_v1, %v119_v0 }
  0xf8   :  { %122 = vadd.xlane.f32.xlu0 %v121_v2 }
 0x181   :  { %v123_v3 = vpop.xlane.xlu0 %122 }
 0x182   :  { %v124_v4 = vrot.slane %v123_v3, 4 }
 0x184   :  { %v125_v5 = vadd.f32 %v124_v4, %v123_v3 }
 0x186   :  { %v126_v6 = vrot.slane %v125_v5, 2 }
 0x188   :  { %v127_v7 = vadd.f32 %v126_v6, %v125_v5 }
 0x18a   :  { %v128_v8 = vrot.slane %v127_v7, 1 }
 0x18c   :  { %v129_v9 = vadd.f32 %v128_v8, %v127_v7 }
 0x18e   :  { %153 = vpush %v129_v9 }
 0x1bf   :  { %s154_s21 = spop %153 }
 0x1c0   :  { %v131_v10 = vstv %s154_s21 }
 0x1c1   :  { %132 = vst [vmem:[#allocation7] sm:$0xff] %v131_v10 }
 0x1c2   :  { %239 = shalt.err (!%p236_p0)
}
 0x1c3   :  { %142 = dma.vmem_to_hbm [thread:$0]  %s140_s1, 128, %s285_s2, [#allocation4]  }
 0x1c4   :  { %252 = dma.done.wait [#allocation4], 128  }
 0x1c5   :  { %253 = vsyncadd [#allocation4], 4294967168 }
 0x1c6   :  { %146 = vsyncpa [#allocation3], 1 }
 0x1c7   :  { %147 = vsyncpa [#allocation6], 1 }
 0x1c8   :  { %148 = vsyncpa [#allocation4], 1 }

</bundles_post_ra>
